<compile_context>
chip_gen: v6e
topology: v6e:2x2x1
jax: 0.10.0
libtpu: 0.0.40
codegen_flags: <defaults>
</compile_context>

<pallas_src>
import jax
import jax.numpy as jnp
from jax import lax
from jax.experimental import pallas as pl
from jax.experimental.pallas import tpu as pltpu

SCALE = 0.1        # self.scale
TEMP = 1.0         # self.temp (== 1.0, so the /temp is folded away)
LN_EPS = 1e-6      # nn.LayerNorm eps
NORM_EPS = 1e-12   # F.normalize eps

# TODO(synk): only the default ContraNorm config (scale>0, dual_norm/pre_norm/
# learnable/positive/identity all False) is implemented.


def _round_up(n, m):
    return ((n + m - 1) // m) * m


def _vmem_estimate(tq, tk, d_pad, itemsize):
    """Rough per-core VMEM footprint: double-buffered blocks + f32 temps."""
    blocks = 2 * (tq * d_pad * itemsize      # query x tile
                  + tq * d_pad * 2           # query xn tile (bf16)
                  + tk * d_pad * 2           # key xn tile (bf16)
                  + tk * 4                   # key norms row
                  + tq * d_pad * itemsize    # output tile
                  + 2 * d_pad * 4)           # gamma + beta
    scratch = tq * d_pad * 4 + tq * 128 * 4  # x_neg acc + denom
    temps = 3 * tq * tk * 4 + 5 * tq * d_pad * 4
    return blocks + scratch + temps


def _pick_tiles(L, d_pad, itemsize, vmem_budget, max_tq):
    """Pick (TQ, TK, L_pad). n_k == 1 (resident keys) whenever it fits."""
    if L <= max_tq:
        tq = _round_up(max(L, 8), 16)        # multiple of 16 for bf16 packing
        return tq, tq, tq
    tq = max_tq
    l_res = _round_up(L, tq)
    if _vmem_estimate(tq, l_res, d_pad, itemsize) <= vmem_budget:
        return tq, l_res, l_res              # all keys resident, n_k == 1
    # KV-tiled (flash-style) fallback: stream keys in TK chunks (mult of 128).
    tk = 512
    while tk > 128 and _vmem_estimate(tq, tk, d_pad, itemsize) > vmem_budget:
        tk //= 2
    l_pad = _round_up(L, max(tq, tk))
    return tq, tk, l_pad


def _make_kernel(L, D, TK, need_key_mask, exp_dtype):
    inv_d = 1.0 / D

    def kernel(xq_ref, xnq_ref, xnk_ref, norms_ref, gamma_ref, beta_ref,
               o_ref, acc_ref, den_ref):
        k = pl.program_id(2)

        @pl.when(k == 0)
        def _init():
            acc_ref[...] = jnp.zeros_like(acc_ref)
            den_ref[...] = jnp.zeros_like(den_ref)

        xnq = xnq_ref[...]                          # (TQ, D_pad) bf16
        xnk = xnk_ref[...]                          # (TK, D_pad) bf16

        # sim = xnq @ xnk^T : NT dot_general, bf16 operands, f32 accumulation.
        sim = lax.dot_general(xnq, xnk, (((1,), (1,)), ((), ())),
                              preferred_element_type=jnp.float32)  # (TQ, TK)

        # Operands are L2-normalized and temp == 1 => sim <= ~1, so exp cannot
        # overflow: no row-max subtraction (saves an XLU reduce per step).
        # exp runs in bf16 on v6e/v7x (EUP bf16), f32 on v5-class chips.
        e = jnp.exp(sim.astype(exp_dtype))
        if need_key_mask:
            key_ids = lax.broadcasted_iota(jnp.int32, sim.shape, 1) + k * TK
            e = jnp.where(key_ids < L, e, jnp.zeros_like(e))

        den_ref[...] += jnp.sum(e.astype(jnp.float32), axis=-1, keepdims=True)

        # x_neg = softmax(sim) @ x  ==  ((e * ||x_k||) @ xn_k) / sum_k(e)
        # Folding the key norms into the probabilities means raw keys are never
        # resident -- only normalized bf16 keys + a (1, TK) norm row vector.
        en = (e * norms_ref[...].astype(exp_dtype)).astype(jnp.bfloat16)
        acc_ref[...] += lax.dot_general(en, xnk, (((1,), (0,)), ((), ())),
                                        preferred_element_type=jnp.float32)

        @pl.when(k == pl.num_programs(2) - 1)
        def _finalize():
            xq = xq_ref[...].astype(jnp.float32)                  # (TQ, D_pad)
            x_neg = acc_ref[...] * pl.reciprocal(den_ref[...], approx=True)
            y = xq - SCALE * x_neg
            # Fused LayerNorm stats over the real D columns: padded feature
            # columns of y are exactly 0, so D_pad sums equal D sums and
            # var = E[y^2] - mean^2 needs no column mask.
            mean = jnp.sum(y, axis=-1, keepdims=True) * inv_d
            ex2 = jnp.sum(y * y, axis=-1, keepdims=True) * inv_d
            var = jnp.maximum(ex2 - mean * mean, 0.0)
            yhat = (y - mean) * lax.rsqrt(var + LN_EPS)
            o_ref[...] = (yhat * gamma_ref[...] + beta_ref[...]).astype(o_ref.dtype)

    return kernel


def contranorm(x, gamma, beta, *, max_tq=None):
    B, L, D = x.shape
    in_dtype = x.dtype
    itemsize = jnp.dtype(in_dtype).itemsize

    # --- generation-aware knobs (tile ceiling, exp dtype, VMEM budget) -------
    kind = ""
    try:
        kind = jax.devices()[0].device_kind.lower()
    except Exception:
        pass
    use_bf16_exp = ("v6" in kind) or ("v7" in kind) or ("tpu7" in kind)
    try:
        vmem_cap = int(pltpu.get_tpu_info().vmem_capacity_bytes)
    except Exception:
        vmem_cap = (64 << 20) if ("7" in kind and "v5" not in kind
                                  and "v6" not in kind) else (128 << 20)
    if max_tq is None:
        max_tq = 256 if "v6" in kind else 128   # v5e MXU M=128; v7x VMEM=64MiB

    D_pad = _round_up(D, 128)
    TQ, TK, L_pad = _pick_tiles(L, D_pad, itemsize, int(0.7 * vmem_cap), max_tq)
    n_q = L_pad // TQ
    n_k = L_pad // TK
    pad_L, pad_D = L_pad - L, D_pad - D

    # --- hoisted key-side precompute (done once, not per q tile) -------------
    xf = x.astype(jnp.float32)
    norm = jnp.maximum(jnp.sqrt(jnp.sum(xf * xf, axis=-1, keepdims=True)),
                       NORM_EPS)                               # (B, L, 1)
    xn = (xf / norm).astype(jnp.bfloat16)                      # (B, L, D)
    norms = norm[:, :, 0].reshape(B, 1, L)                     # (B, 1, L) f32

    # Pad only the dims that actually need it.
    if pad_L or pad_D:
        x_p = jnp.pad(x, ((0, 0), (0, pad_L), (0, pad_D)))
        xn_p = jnp.pad(xn, ((0, 0), (0, pad_L), (0, pad_D)))
    else:
        x_p, xn_p = x, xn
    norms_p = jnp.pad(norms, ((0, 0), (0, 0), (0, pad_L))) if pad_L else norms
    gamma_p = gamma.reshape(1, D).astype(jnp.float32)
    beta_p = beta.reshape(1, D).astype(jnp.float32)
    if pad_D:
        gamma_p = jnp.pad(gamma_p, ((0, 0), (0, pad_D)))
        beta_p = jnp.pad(beta_p, ((0, 0), (0, pad_D)))

    kernel = _make_kernel(
        L, D, TK, need_key_mask=(L_pad > L),
        exp_dtype=jnp.bfloat16 if use_bf16_exp else jnp.float32)

    vmem_limit = min(int(0.9 * vmem_cap), 100 * 2 ** 20)

    out = pl.pallas_call(
        kernel,
        out_shape=jax.ShapeDtypeStruct((B, L_pad, D_pad), in_dtype),
        grid_spec=pltpu.PrefetchScalarGridSpec(
            num_scalar_prefetch=0,
            grid=(B, n_q, n_k),
            in_specs=[
                pl.BlockSpec((None, TQ, D_pad), lambda b, q, k: (b, q, 0)),  # x  (query tile)
                pl.BlockSpec((None, TQ, D_pad), lambda b, q, k: (b, q, 0)),  # xn (query tile, bf16)
                pl.BlockSpec((None, TK, D_pad), lambda b, q, k: (b, k, 0)),  # xn (key tile, bf16)
                pl.BlockSpec((None, 1, TK),     lambda b, q, k: (b, 0, k)),  # key norms
                pl.BlockSpec((1, D_pad),        lambda b, q, k: (0, 0)),     # gamma
                pl.BlockSpec((1, D_pad),        lambda b, q, k: (0, 0)),     # beta
            ],
            out_specs=pl.BlockSpec((None, TQ, D_pad), lambda b, q, k: (b, q, 0)),
            scratch_shapes=[
                pltpu.VMEM((TQ, D_pad), jnp.float32),   # x_neg accumulator
                pltpu.VMEM((TQ, 1), jnp.float32),       # softmax denominator
            ],
        ),
        compiler_params=pltpu.CompilerParams(
            dimension_semantics=("parallel", "parallel", "arbitrary"),
            vmem_limit_bytes=vmem_limit),
    )(x_p, xn_p, xn_p, norms_p, gamma_p, beta_p)

    if pad_L or pad_D:
        out = out[:, :L, :D]
    return out


def contranorm_ref(x, gamma, beta):
    # Pure-JAX reference mirroring the PyTorch forward (default config).
    xf = x.astype(jnp.float32)
    norm = jnp.sqrt(jnp.sum(xf * xf, axis=-1, keepdims=True))
    xn = xf / jnp.maximum(norm, NORM_EPS)
    sim = jnp.einsum("bld,bmd->blm", xn, xn) / TEMP
    sim = jax.nn.softmax(sim, axis=-1)
    x_neg = jnp.einsum("blm,bmd->bld", sim, xf)
    y = xf - SCALE * x_neg
    mean = jnp.mean(y, axis=-1, keepdims=True)
    var = jnp.mean((y - mean) ** 2, axis=-1, keepdims=True)
    yhat = (y - mean) / jnp.sqrt(var + LN_EPS)
    return (yhat * gamma.reshape(1, 1, -1) + beta.reshape(1, 1, -1)).astype(x.dtype)


if __name__ == "__main__":
    B, L, D = 2, 8, 32  # small (batch, seq, dim) consistent with the module
    key = jax.random.PRNGKey(0)
    x = jax.random.normal(key, (B, L, D), dtype=jnp.float32)

    # LayerNorm parameters, deterministic init (matches nn.LayerNorm defaults).
    gamma = jnp.ones((D,), dtype=jnp.float32)
    beta = jnp.zeros((D,), dtype=jnp.float32)

    out = jax.block_until_ready(contranorm(x, gamma, beta))
    ref = contranorm_ref(x, gamma, beta)

    # bf16 MXU operands, bf16 exp (on v6e/v7x) and the approx softmax
    # reciprocal introduce ~1e-3..1e-2-level deviation vs. the f32 reference.
    err = jnp.max(jnp.abs(out - ref))
    assert jnp.allclose(out, ref, atol=2e-2, rtol=2e-2), f"max diff {err}"

    print("KERNEL_OK")
</pallas_src>

<mosaic_0001>
module attributes {stable_mosaic.version = 11 : i64} {
  func.func @kernel(%arg0: i32, %arg1: i32, %arg2: i32, %arg3: memref<1x16x128xf32, #tpu.memory_space<vmem>>, %arg4: memref<1x16x128xbf16, #tpu.memory_space<vmem>>, %arg5: memref<1x16x128xbf16, #tpu.memory_space<vmem>>, %arg6: memref<1x1x16xf32, #tpu.memory_space<vmem>>, %arg7: memref<1x128xf32, #tpu.memory_space<vmem>>, %arg8: memref<1x128xf32, #tpu.memory_space<vmem>>, %arg9: memref<1x16x128xf32, #tpu.memory_space<vmem>>, %arg10: memref<16x128xf32, #tpu.memory_space<vmem>>, %arg11: memref<16x1xf32, #tpu.memory_space<vmem>>) attributes {dimension_semantics = [#tpu.dimension_semantics<parallel>, #tpu.dimension_semantics<parallel>, #tpu.dimension_semantics<arbitrary>], iteration_bounds = array<i64: 2, 1, 1>, scalar_prefetch = 0 : i64, scratch_operands = 2 : i64, tpu.core_type = #tpu.core_type<tc>, window_params = [{transform_indices = @transform_0, window_bounds = array<i64: 1, 16, 128>}, {transform_indices = @transform_1, window_bounds = array<i64: 1, 16, 128>}, {transform_indices = @transform_2, window_bounds = array<i64: 1, 16, 128>}, {transform_indices = @transform_3, window_bounds = array<i64: 1, 1, 16>}, {pipeline_mode = #tpu.pipeline_mode<synchronous>, transform_indices = @transform_4, window_bounds = array<i64: 1, 128>}, {pipeline_mode = #tpu.pipeline_mode<synchronous>, transform_indices = @transform_5, window_bounds = array<i64: 1, 128>}, {transform_indices = @transform_6, window_bounds = array<i64: 1, 16, 128>}]} {
    %c0_i32 = arith.constant 0 : i32
    %0 = arith.cmpi eq, %arg2, %c0_i32 : i32
    %1 = arith.extui %0 : i1 to i32
    %c0_i32_0 = arith.constant 0 : i32
    %2 = arith.cmpi ne, %1, %c0_i32_0 : i32
    scf.if %2 {
      %cst_22 = arith.constant 0.000000e+00 : f32
      %34 = vector.broadcast %cst_22 : f32 to vector<16x128xf32>
      %c0_23 = arith.constant 0 : index
      %c0_24 = arith.constant 0 : index
      %35 = vector.load %arg10[%c0_23, %c0_24] : memref<16x128xf32, #tpu.memory_space<vmem>>, vector<16x128xf32>
      tpu.vector_store %arg10[%c0_23, %c0_24], %34 {strides = array<i32>} : memref<16x128xf32, #tpu.memory_space<vmem>>, vector<16x128xf32>,
      %cst_25 = arith.constant 0.000000e+00 : f32
      %36 = vector.broadcast %cst_25 : f32 to vector<16x1xf32>
      %c0_26 = arith.constant 0 : index
      %c0_27 = arith.constant 0 : index
      %37 = vector.load %arg11[%c0_26, %c0_27] : memref<16x1xf32, #tpu.memory_space<vmem>>, vector<16x1xf32>
      tpu.vector_store %arg11[%c0_26, %c0_27], %36 {strides = array<i32>} : memref<16x1xf32, #tpu.memory_space<vmem>>, vector<16x1xf32>,
    } else {
    }
    %c0 = arith.constant 0 : index
    %c0_1 = arith.constant 0 : index
    %c0_2 = arith.constant 0 : index
    %3 = vector.load %arg4[%c0, %c0_1, %c0_2] : memref<1x16x128xbf16, #tpu.memory_space<vmem>>, vector<1x16x128xbf16>
    %4 = vector.shape_cast %3 : vector<1x16x128xbf16> to vector<16x128xbf16>
    %c0_3 = arith.constant 0 : index
    %c0_4 = arith.constant 0 : index
    %c0_5 = arith.constant 0 : index
    %5 = vector.load %arg5[%c0_3, %c0_4, %c0_5] : memref<1x16x128xbf16, #tpu.memory_space<vmem>>, vector<1x16x128xbf16>
    %6 = vector.shape_cast %5 : vector<1x16x128xbf16> to vector<16x128xbf16>
    %cst = arith.constant dense<0.000000e+00> : vector<16x16xf32>
    %7 = tpu.matmul %4, %6, %cst {dimension_numbers = #tpu.dot_dimension_numbers<[1], [1], [0], [0], [0, 0, 1, 0], [], []>} : vector<16x128xbf16>, vector<16x128xbf16>, vector<16x16xf32> -> vector<16x16xf32>
    %8 = math.exp %7 : vector<16x16xf32>
    %9 = tpu.iota {dimensions = array<i32: 1>} : vector<16x16xi32>
    %c16_i32 = arith.constant 16 : i32
    %10 = arith.muli %arg2, %c16_i32 : i32
    %11 = vector.broadcast %10 : i32 to vector<16x16xi32>
    %12 = arith.addi %9, %11 : vector<16x16xi32>
    %c8_i32 = arith.constant 8 : i32
    %13 = vector.broadcast %c8_i32 : i32 to vector<16x16xi32>
    %14 = arith.cmpi slt, %12, %13 : vector<16x16xi32>
    %cst_6 = arith.constant 0.000000e+00 : f32
    %15 = vector.broadcast %cst_6 : f32 to vector<16x16xf32>
    %16 = arith.select %14, %8, %15 : vector<16x16xi1>, vector<16x16xf32>
    %c0_7 = arith.constant 0 : index
    %c0_8 = arith.constant 0 : index
    %17 = vector.load %arg11[%c0_7, %c0_8] : memref<16x1xf32, #tpu.memory_space<vmem>>, vector<16x1xf32>
    %cst_9 = arith.constant dense<0.000000e+00> : vector<16xf32>
    %18 = vector.multi_reduction <add>, %16, %cst_9 [1] : vector<16x16xf32> to vector<16xf32>
    %19 = vector.shape_cast %18 : vector<16xf32> to vector<16x1xf32>
    %20 = arith.addf %17, %19 : vector<16x1xf32>
    %c0_10 = arith.constant 0 : index
    %c0_11 = arith.constant 0 : index
    %21 = vector.load %arg11[%c0_10, %c0_11] : memref<16x1xf32, #tpu.memory_space<vmem>>, vector<16x1xf32>
    tpu.vector_store %arg11[%c0_10, %c0_11], %20 {strides = array<i32>} : memref<16x1xf32, #tpu.memory_space<vmem>>, vector<16x1xf32>,
    %c0_12 = arith.constant 0 : index
    %c0_13 = arith.constant 0 : index
    %c0_14 = arith.constant 0 : index
    %22 = vector.load %arg6[%c0_12, %c0_13, %c0_14] : memref<1x1x16xf32, #tpu.memory_space<vmem>>, vector<1x1x16xf32>
    %23 = vector.shape_cast %22 : vector<1x1x16xf32> to vector<1x16xf32>
    %24 = vector.broadcast %23 : vector<1x16xf32> to vector<16x16xf32>
    %25 = arith.mulf %16, %24 : vector<16x16xf32>
    %26 = arith.truncf %25 : vector<16x16xf32> to vector<16x16xbf16>
    %c0_15 = arith.constant 0 : index
    %c0_16 = arith.constant 0 : index
    %27 = vector.load %arg10[%c0_15, %c0_16] : memref<16x128xf32, #tpu.memory_space<vmem>>, vector<16x128xf32>
    %cst_17 = arith.constant dense<0.000000e+00> : vector<16x128xf32>
    %28 = tpu.matmul %26, %6, %cst_17 {dimension_numbers = #tpu.dot_dimension_numbers<[1], [0], [0], [1], [0, 0, 1, 1], [], []>} : vector<16x16xbf16>, vector<16x128xbf16>, vector<16x128xf32> -> vector<16x128xf32>
    %29 = arith.addf %27, %28 : vector<16x128xf32>
    %c0_18 = arith.constant 0 : index
    %c0_19 = arith.constant 0 : index
    %30 = vector.load %arg10[%c0_18, %c0_19] : memref<16x128xf32, #tpu.memory_space<vmem>>, vector<16x128xf32>
    tpu.vector_store %arg10[%c0_18, %c0_19], %29 {strides = array<i32>} : memref<16x128xf32, #tpu.memory_space<vmem>>, vector<16x128xf32>,
    %c0_i32_20 = arith.constant 0 : i32
    %31 = arith.cmpi eq, %arg2, %c0_i32_20 : i32
    %32 = arith.extui %31 : i1 to i32
    %c0_i32_21 = arith.constant 0 : i32
    %33 = arith.cmpi ne, %32, %c0_i32_21 : i32
    scf.if %33 {
      %c0_22 = arith.constant 0 : index
      %c0_23 = arith.constant 0 : index
      %c0_24 = arith.constant 0 : index
      %34 = vector.load %arg3[%c0_22, %c0_23, %c0_24] : memref<1x16x128xf32, #tpu.memory_space<vmem>>, vector<1x16x128xf32>
      %35 = vector.shape_cast %34 : vector<1x16x128xf32> to vector<16x128xf32>
      %c0_25 = arith.constant 0 : index
      %c0_26 = arith.constant 0 : index
      %36 = vector.load %arg10[%c0_25, %c0_26] : memref<16x128xf32, #tpu.memory_space<vmem>>, vector<16x128xf32>
      %c0_27 = arith.constant 0 : index
      %c0_28 = arith.constant 0 : index
      %37 = vector.load %arg11[%c0_27, %c0_28] : memref<16x1xf32, #tpu.memory_space<vmem>>, vector<16x1xf32>
      %38 = tpu.reciprocal %37 {approx = true} : vector<16x1xf32> -> vector<16x1xf32>
      %39 = vector.broadcast %38 : vector<16x1xf32> to vector<16x128xf32>
      %40 = arith.mulf %36, %39 : vector<16x128xf32>
      %cst_29 = arith.constant 1.000000e-01 : f32
      %41 = vector.broadcast %cst_29 : f32 to vector<16x128xf32>
      %42 = arith.mulf %41, %40 : vector<16x128xf32>
      %43 = arith.subf %35, %42 : vector<16x128xf32>
      %cst_30 = arith.constant dense<0.000000e+00> : vector<16xf32>
      %44 = vector.multi_reduction <add>, %43, %cst_30 [1] : vector<16x128xf32> to vector<16xf32>
      %45 = vector.shape_cast %44 : vector<16xf32> to vector<16x1xf32>
      %cst_31 = arith.constant 3.125000e-02 : f32
      %46 = vector.broadcast %cst_31 : f32 to vector<16x1xf32>
      %47 = arith.mulf %45, %46 : vector<16x1xf32>
      %48 = arith.mulf %43, %43 : vector<16x128xf32>
      %cst_32 = arith.constant dense<0.000000e+00> : vector<16xf32>
      %49 = vector.multi_reduction <add>, %48, %cst_32 [1] : vector<16x128xf32> to vector<16xf32>
      %50 = vector.shape_cast %49 : vector<16xf32> to vector<16x1xf32>
      %cst_33 = arith.constant 3.125000e-02 : f32
      %51 = vector.broadcast %cst_33 : f32 to vector<16x1xf32>
      %52 = arith.mulf %50, %51 : vector<16x1xf32>
      %53 = arith.mulf %47, %47 : vector<16x1xf32>
      %54 = arith.subf %52, %53 : vector<16x1xf32>
      %cst_34 = arith.constant 0.000000e+00 : f32
      %55 = vector.broadcast %cst_34 : f32 to vector<16x1xf32>
      %56 = arith.maximumf %54, %55 : vector<16x1xf32>
      %57 = vector.broadcast %47 : vector<16x1xf32> to vector<16x128xf32>
      %58 = arith.subf %43, %57 : vector<16x128xf32>
      %cst_35 = arith.constant 9.99999997E-7 : f32
      %59 = vector.broadcast %cst_35 : f32 to vector<16x1xf32>
      %60 = arith.addf %56, %59 : vector<16x1xf32>
      %61 = math.rsqrt %60 : vector<16x1xf32>
      %62 = vector.broadcast %61 : vector<16x1xf32> to vector<16x128xf32>
      %63 = arith.mulf %58, %62 : vector<16x128xf32>
      %c0_36 = arith.constant 0 : index
      %c0_37 = arith.constant 0 : index
      %64 = vector.load %arg7[%c0_36, %c0_37] : memref<1x128xf32, #tpu.memory_space<vmem>>, vector<1x128xf32>
      %65 = vector.broadcast %64 : vector<1x128xf32> to vector<16x128xf32>
      %66 = arith.mulf %63, %65 : vector<16x128xf32>
      %c0_38 = arith.constant 0 : index
      %c0_39 = arith.constant 0 : index
      %67 = vector.load %arg8[%c0_38, %c0_39] : memref<1x128xf32, #tpu.memory_space<vmem>>, vector<1x128xf32>
      %68 = vector.broadcast %67 : vector<1x128xf32> to vector<16x128xf32>
      %69 = arith.addf %66, %68 : vector<16x128xf32>
      %c0_40 = arith.constant 0 : index
      %c0_41 = arith.constant 0 : index
      %c0_42 = arith.constant 0 : index
      %70 = vector.load %arg9[%c0_40, %c0_41, %c0_42] : memref<1x16x128xf32, #tpu.memory_space<vmem>>, vector<1x16x128xf32>
      %71 = vector.shape_cast %70 : vector<1x16x128xf32> to vector<16x128xf32>
      %72 = vector.shape_cast %69 : vector<16x128xf32> to vector<1x16x128xf32>
      tpu.vector_store %arg9[%c0_40, %c0_41, %c0_42], %72 {strides = array<i32>} : memref<1x16x128xf32, #tpu.memory_space<vmem>>, vector<1x16x128xf32>,
    } else {
    }
    return
  }
  func.func @transform_0(%arg0: i32, %arg1: i32, %arg2: i32) -> (i32, i32, i32) {
    %c0_i32 = arith.constant 0 : i32
    %c0_i32_0 = arith.constant 0 : i32
    return %arg0, %arg1, %c0_i32 : i32, i32, i32
  }
  func.func @transform_1(%arg0: i32, %arg1: i32, %arg2: i32) -> (i32, i32, i32) {
    %c0_i32 = arith.constant 0 : i32
    %c0_i32_0 = arith.constant 0 : i32
    return %arg0, %arg1, %c0_i32 : i32, i32, i32
  }
  func.func @transform_2(%arg0: i32, %arg1: i32, %arg2: i32) -> (i32, i32, i32) {
    %c0_i32 = arith.constant 0 : i32
    %c0_i32_0 = arith.constant 0 : i32
    return %arg0, %arg2, %c0_i32 : i32, i32, i32
  }
  func.func @transform_3(%arg0: i32, %arg1: i32, %arg2: i32) -> (i32, i32, i32) {
    %c0_i32 = arith.constant 0 : i32
    %c0_i32_0 = arith.constant 0 : i32
    return %arg0, %c0_i32, %arg2 : i32, i32, i32
  }
  func.func @transform_4(%arg0: i32, %arg1: i32, %arg2: i32) -> (i32, i32) {
    %c0_i32 = arith.constant 0 : i32
    %c0_i32_0 = arith.constant 0 : i32
    %c0_i32_1 = arith.constant 0 : i32
    return %c0_i32, %c0_i32_0 : i32, i32
  }
  func.func @transform_5(%arg0: i32, %arg1: i32, %arg2: i32) -> (i32, i32) {
    %c0_i32 = arith.constant 0 : i32
    %c0_i32_0 = arith.constant 0 : i32
    %c0_i32_1 = arith.constant 0 : i32
    return %c0_i32, %c0_i32_0 : i32, i32
  }
  func.func @transform_6(%arg0: i32, %arg1: i32, %arg2: i32) -> (i32, i32, i32) {
    %c0_i32 = arith.constant 0 : i32
    %c0_i32_0 = arith.constant 0 : i32
    return %arg0, %arg1, %c0_i32 : i32, i32, i32
  }
}

</mosaic_0001>

<bundles_post_ra>
// kernel: tpu_custom_call.1
= control target key start
LH: loop header
LB: loop body
LE: loop exit
PB: predicated region body
PF: predicated region fallthrough
CT: control target
= control target key end

     0   :  { %s1400_s0 = inlined_call_operand.hbm [shape: f32[2,16,128], index: 0, kind: input, shape index: {}]   ;;  %s1401_s1 = inlined_call_operand.hbm [shape: bf16[2,16,128], index: 1, kind: input, shape index: {}]   ;;  %s1402_s2 = inlined_call_operand.hbm [shape: bf16[2,16,128], index: 2, kind: input, shape index: {}]   ;;  %s1403_s3 = inlined_call_operand.vmem [shape: f32[2,1,16], index: 3, kind: input, shape index: {}]   ;;  %s1404_s4 = inlined_call_operand.vmem [shape: f32[1,128], index: 4, kind: input, shape index: {}]   ;;  %s1405_s5 = inlined_call_operand.vmem [shape: f32[1,128], index: 5, kind: input, shape index: {}]   ;;  %s1406_s6 = inlined_call_operand.hbm [shape: f32[2,16,128], index: 6, kind: output, shape index: {}]  }
   0x1   :  { %1412 = sst [smem:[#allocation18_spill]] %s1401_s1 }
   0x2   :  { %1413 = sst [smem:[#allocation19_spill]] %s1402_s2 }
   0x3   :  { %11 = vsyncpa [#allocation5], 0 }
   0x4   :  { %13 = vsyncpa [#allocation5 + $0x1], 0 }
   0x5   :  { %14 = vsyncpa [#allocation8], 0 }
   0x6   :  { %16 = vsyncpa [#allocation8 + $0x1], 0 }
   0x7   :  { %17 = vsyncpa [#allocation6], 0 }
   0x8   :  { %19 = vsyncpa [#allocation6 + $0x1], 0  ;;  %s1168_s21 = smov 0   ;;  %s1170_s22 = smov 0  }
   0x9   :  { %s1172_s23 = smov 0   ;;  %s1174_s24 = smov 0  }
   0xa   :  { %s1176_s25 = smov 0   ;;  %s1178_s26 = smov 0  }
   0xb LB: > { %1414 = sst [smem:[#allocation14_spill]] %s1106_s23  ;;  %s1199_s27 = sadd.s32 4294967295, %s1118_s26   ;;  %s1118_s26 = sphi %s1178_s26, %s25_s26   ;;  %s1114_s25 = sphi %s1176_s25, %s1437_s25   ;;  %s1110_s24 = sphi %s1174_s24, %s1436_s24   ;;  %s1106_s23 = sphi %s1172_s23, %s1435_s23   ;;  %s1102_s22 = sphi %s1170_s22, %s1434_s22   ;;  %s1098_s21 = sphi %s1168_s21, %s1433_s21  }
   0xc   : > { %s805_s28 = sadd.s32 4294967294, %s1118_s26   ;;  %s44_s29 = sadd.s32 1, %s1114_s25 }
   0xd   : > { %s53_s30 = sadd.s32 1, %s1106_s23  ;;  %p46_p0 = scmp.ge.s32.totalorder %s44_s29, 2 }
   0xe   : > { %p60_p1 = scmp.ne.s32.totalorder %s1106_s23, %s1102_s22  ;;  %p61_p2 = scmp.eq.s32.totalorder %s1118_s26, 0 }
   0xf   : > { %p66_p3 = scmp.ne.s32.totalorder %s1102_s22, %s1098_s21  ;;  %s1439_s29 = smov (%p46_p0, %s44_s29), 0 }
  0x10   : > { %1415 = sst [smem:[#allocation15_spill]] %s1439_s29  ;;  %p1211_p4 = por %p61_p2, %p60_p1 }
  0x11   : > { %p67_p5 = scmp.eq.s32.totalorder %s1199_s27, 0  ;;  %s48_s8 = ssub.s32 %s1114_s25, %s1439_s29 }
  0x12   : > { %p218_p6 = scmp.eq.s32.totalorder %s1199_s27, 1  ;;  %p51_p7 = scmp.eq.s32.totalorder %s48_s8, 0 }
  0x13   : > { %p1219_p8 = por %p67_p5, %p66_p3  ;;  %p224_p10 = scmp.eq.s32.totalorder %s805_s28, 1 }
  0x14   : > { %p1223_p9 = por %p218_p6, %p60_p1  ;;  %p875_p13 = scmp.lt.s32.totalorder %s1118_s26, 2 }
  0x15   : > { %s1228_s11 = scalar_select %p51_p7, %s1106_s23, %s53_s30  }
  0x16   : > { %p1230_p11 = por %p224_p10, %p66_p3  ;;  %s1237_s13 = sand.u32 1, %s1106_s23  }
  0x17   : > { %1419 = sst [smem:[#allocation16_spill]] %s1228_s11  ;;  %s273_s14 = sand.u32 1, %s1118_s26  }
  0x18   : > { %s1420_s12 = scalar_select %p1230_p11, 1, 0 }
  0x19   : > { %s811_s15 = sshll.u32 %s1237_s13, 3  ;;  %p1243_p0 = pnand %p875_p13, %p1211_p4 }
  0x1a   : > { %1421 = sst [smem:[#allocation17_spill]] %s1420_s12  ;;  %s834_s17 = sshll.u32 %s1114_s25, 7 }
  0x1b   : > { %s1423_s1 = sld [smem:[#allocation18_spill]]  ;;  %s277_s28 = scalar_lea.vmem [#allocation7], %s811_s15 }
  0x1c   : > { %s286_s30 = sshll.u32 %s277_s28, 4  ;;  %s1253_s8 = scalar_lea.sflag [#allocation8], %s273_s14  ;;  %s287_s30 = int_to_ptr.vmem [resolvable:$true] %s286_s30 }
  0x1d   : > { %p952_p1 = pneg %p1243_p0  ;;  %s963_s7 = scalar_lea.vmem %s287_s30, 128 }
  0x1e   : > { %p964_p2 = scmp.ne.s32.totalorder %s287_s30, %s963_s7  ;;  %s1120_s29 = smov [#allocation7]  }
  0x1f   : > { %s968_s11 = sshll.u32 %s1120_s29, 4  ;;  %s969_s11 = int_to_ptr.vmem [resolvable:$false] %s968_s11 }
  0x20   : > { %p966_p3 = pnand %p964_p2, %p952_p1  ;;  %s970_s23 = scalar_lea.vmem %s969_s11, 256 }
  0x21   : > { %s285_s20 = scalar_lea.hbm %s1423_s1, %s834_s17  ;;  %p971_p5 = scmp.lt.s32.totalorder %s287_s30, %s969_s11 }
  0x22   : > { %p967_p4 = pneg %p966_p3  ;;  %p972_p6 = scmp.lt.s32.totalorder %s970_s23, %s963_s7 }
  0x24   : > { %p973_p7 = por %p972_p6, %p971_p5 }
  0x26   : > { %p974_p10 = pnand %p973_p7, %p967_p4 }
  0x28   : > { %977 = shalt.err (!%p974_p10)
}
  0x29   : > { %s1410_s18 = smov 64   ;;  %s1411_s14 = smov 4  }
  0x2a   : > { %867 = dma.hbm_to_vmem [thread:$0]  (!%p1243_p0), %s285_s20, 128, %s287_s30, %s1253_s8, %s1410_s18, %s1410_s18, %s1411_s14  }
  0x2b   : > { %s1424_s2 = sld [smem:[#allocation19_spill]]  ;;  %s300_s19 = scalar_lea.vmem [#allocation9], %s811_s15 }
  0x2c   : > { %s309_s28 = sshll.u32 %s300_s19, 4  ;;  %p817_p13 = scmp.ge.s32.totalorder %s1118_s26, 1  ;;  %s1274_s28 = int_to_ptr.vmem [resolvable:$true] %s309_s28 }
  0x2d   : > { %p326_p2 = scmp.lt.s32.totalorder %s1118_s26, 3  ;;  %s808_s1 = sshll.u32 %s1237_s13, 4 }
  0x2e   : > { %s833_s12 = sshll.u32 %s1114_s25, 8  ;;  %s251_s18 = scalar_lea.sflag [#allocation5], %s1237_s13 }
  0x2f   : > { %p1277_p3 = pnand %p817_p13, %p326_p2  ;;  %s262_s29 = scalar_lea.hbm %s1400_s0, %s833_s12 }
  0x30   : > { %s1123_s19 = smov [#allocation4]  }
  0x31   : > { %s1269_s11 = scalar_lea.hbm %s1424_s2, %s834_s17  ;;  %s254_s17 = scalar_lea.vmem [#allocation4], %s808_s1 }
  0x32   : > { %s263_s23 = sshll.u32 %s254_s17, 4  ;;  %s996_s14 = sshll.u32 %s1123_s19, 4  ;;  %s264_s23 = int_to_ptr.vmem [resolvable:$true] %s263_s23  ;;  %s997_s14 = int_to_ptr.vmem [resolvable:$false] %s996_s14 }
  0x33   : > { %s991_s15 = scalar_lea.vmem %s264_s23, 256  ;;  %s998_s2 = scalar_lea.vmem %s997_s14, 512 }
  0x34   : > { %p992_p4 = scmp.ne.s32.totalorder %s264_s23, %s991_s15  ;;  %p999_p7 = scmp.lt.s32.totalorder %s264_s23, %s997_s14 }
  0x35   : > { %p1000_p10 = scmp.lt.s32.totalorder %s998_s2, %s991_s15 }
  0x36   : > { %p994_p5 = pnand %p992_p4, %p952_p1 }
  0x37   : > { %p1001_p13 = por %p1000_p10, %p999_p7 }
  0x38   : > { %p995_p6 = pneg %p994_p5 }
  0x3a   : > { %p1002_p2 = pnand %p1001_p13, %p995_p6 }
  0x3c   : > { %1005 = shalt.err (!%p1002_p2)
}
  0x3d   : > { %s1124_s12 = smov 128   ;;  %s1125_s1 = smov 8  }
  0x3e   : > { %864 = dma.hbm_to_vmem [thread:$0]  (!%p1243_p0), %s262_s29, 256, %s264_s23, %s251_s18, %s1124_s12, %s1124_s12, %s1125_s1  }
  0x3f   : > { %s1019_s13 = scalar_lea.vmem %s1274_s28, 128  ;;  %s1126_s14 = smov [#allocation9]  }
  0x40   : > { %p1020_p4 = scmp.ne.s32.totalorder %s1274_s28, %s1019_s13  ;;  %s1024_s2 = sshll.u32 %s1126_s14, 4  ;;  %s1025_s2 = int_to_ptr.vmem [resolvable:$false] %s1024_s2 }
  0x41   : > { %s1026_s20 = scalar_lea.vmem %s1025_s2, 256  ;;  %p1027_p6 = scmp.lt.s32.totalorder %s1274_s28, %s1025_s2 }
  0x42   : > { %p1022_p5 = pnand %p1020_p4, %p952_p1  ;;  %p1028_p7 = scmp.lt.s32.totalorder %s1026_s20, %s1019_s13 }
  0x44   : > { %p1023_p12 = pneg %p1022_p5  ;;  %p1029_p10 = por %p1028_p7, %p1027_p6 }
  0x46   : > { %p1030_p13 = pnand %p1029_p10, %p1023_p12 }
  0x48   : > { %1033 = shalt.err (!%p1030_p13)
}
  0x49   : > { %s1426_s30 = smov 4   ;;  %s1427_s17 = smov 64  }
  0x4a   : > { %870 = dma.hbm_to_vmem [thread:$0]  (!%p1243_p0), %s1269_s11, 128, %s1274_s28, %s1253_s8, %s1427_s17, %s1427_s17, %s1426_s30  }
  0x4b   : > { %330 = sbr.rel (%p1277_p3) target bundleno = 785 (0x311), region = 44  ;;  %s1309_s18 = sand.u32 (!%p1277_p3), 1, %s1102_s22  }
  0x4c   : > { %s818_s29 = sshll.u32 (!%p1277_p3), %s1309_s18, 4  ;;  %s333_s23 = scalar_lea.sflag (!%p1277_p3), [#allocation5], %s1309_s18 }
  0x4d   : > { %s1315_s16 = scalar_lea.vmem (!%p1277_p3), [#allocation4], %s818_s29 }
  0x50   : > { %1085 = dma.done.wait (%p1219_p8), %s333_s23, 256  }
  0x51   : > { %1087 = vsyncadd (%p1219_p8), %s333_s23, 4294967040  ;;  %s341_s8 = sand.u32 1, %s1199_s27   ;;  %s819_s11 = sshll.u32 %s1309_s18, 3 }
  0x52   : > { %s342_s28 = scalar_lea.sflag [#allocation8], %s341_s8  ;;  %s345_s7 = scalar_lea.vmem [#allocation7], %s819_s11 }
  0x53   : > { %1089 = dma.done.wait (%p1219_p8), %s342_s28, 256  }
  0x54   : > { %1091 = vsyncadd (%p1219_p8), %s342_s28, 4294967040  ;;  %v1127_v0 = vmov 0.0   ;;  %vm1128_vm0 = vmmov 0   ;;  %s354_s15 = scalar_lea.vmem [#allocation9], %s819_s11  ;;  %v937_v2 = vld [vmem:[%s345_s7] sm:$0xff]   ;;  %vm416_vm1 = vcmask 7168   ;;  %v480_v9 = vlaneseq }
  0x55   : > { %841 = vmatprep.subr.bf16.mxu0 %v1127_v0  ;;  %843 = vmatprep.mubr.msk.bf16.mxu0 %vm1128_vm0, %v1127_v0  ;;  %v936_v1 = vld [vmem:[%s354_s15] sm:$0xff]   ;;  %417 = vst.msk [vmem:[#allocation3] sm:$0xff] %vm416_vm1, %v1127_v0  ;;  %418 = vst.msk [vmem:[#allocation3 + $0x8] sm:$0xff] %vm416_vm1, %v1127_v0  ;;  %p402_p8 = scmp.lt.s32.totalorder %s1110_s24, 1  ;;  %vm490_vm3 = vcmask 130048   ;;  %v1129_v21 = vmov 0  }
  0x56   : > { %847 = vmatprep.subr.bf16.mxu1 %v1127_v0  ;;  %849 = vmatprep.mubr.msk.bf16.mxu1 %vm1128_vm0, %v1127_v0  ;;  %v481_v10 = vand.u32 127, %v480_v9  ;;  %v565_v38 = vld [vmem:[%s1315_s16] sm:$0xff]  ;;  %v566_v43 = vld [vmem:[%s1315_s16 + $0x8] sm:$0xff]  ;;  %s836_s20 = sshll.u32 %s1110_s24, 8  ;;  %s398_s30 = scalar_lea.vmem [#allocation10], %s818_s29 }
  0x57   : > { %842 = vmatpush3.bf16.xpose.msra.mxu0 %v936_v1  ;;  %848 = vmatpush3.bf16.msra.mxu1 %v936_v1  ;;  %s403_s27 = scalar_select %p402_p8, %s1110_s24, 1 }
  0x58   : > { %vm485_vm2 = vcmp.lt.s32.totalorder %v481_v10, 8  ;;  %934 = vset.pattern.permute.xlu1 %v1129_v21  ;;  %935 = vset.pattern.permute.xlu0 %v1129_v21  ;;  %s653_s17 = sshll.u32 %s398_s30, 4  ;;  %s1350_s8 = scalar_lea.hbm %s1406_s6, %s836_s20  ;;  %s1352_s17 = int_to_ptr.vmem [resolvable:$true] %s653_s17 }
  0x59   : > { %s407_s12 = scalar_lea.vmem %s1403_s3, %s403_s27  ;;  %s638_s11 = scalar_lea.sflag [#allocation6], %s1309_s18 }
  0x5a   : > { %v824_v14 = vld [vmem:[%s407_s12] ss:$0 sm:$0xff]  ;;  %s1034_s28 = scalar_lea.vmem %s1352_s17, 256  ;;  %s1130_s24 = smov [#allocation10]  }
  0x5b   : > { %p1035_p12 = scmp.ne.s32.totalorder %s1352_s17, %s1034_s28  ;;  %s1038_s29 = sshll.u32 %s1130_s24, 4  ;;  %s1039_s29 = int_to_ptr.vmem [resolvable:$false] %s1038_s29 }
  0x5c   : > { %v488_v22 = vld [vmem:[#allocation3] sm:$0xff]  ;;  %v489_v25 = vld [vmem:[#allocation3 + $0x8] sm:$0xff]  ;;  %s1040_s7 = scalar_lea.vmem %s1039_s29, 512  ;;  %p1041_p3 = scmp.lt.s32.totalorder %s1352_s17, %s1039_s29 }
  0x5d   : > { %p1036_p0 = pnand %p1035_p12, %p1223_p9  ;;  %p1042_p2 = scmp.lt.s32.totalorder %s1040_s7, %s1034_s28 }
  0x5e   : > { %844 = vmatmul.mubr.bf16.vlgmr.msra.gmra.mxu0 %v937_v2  ;;  %v826_v2 = vld [vmem:[%s1404_s4] ss:$0 sm:$0xff] }
  0x5f   : > { %p1037_p1 = pneg %p1036_p0  ;;  %p1043_p4 = por %p1042_p2, %p1041_p3 }
  0x61   : > { %p1044_p5 = pnand %p1043_p4, %p1037_p1 }
 0x11e   : > { %v469_v3 = vpop.f32.mrf.mxu0 }
 0x11f   : > { %v476_v4 = vmul.f32 1.442695, %v469_v3 }
 0x120   : > { %v845_v5 = vpop.f32.mrf.mxu0 }
 0x121   : > { %938 = vpow2.f32 %v476_v4  ;;  %v827_v4 = vld [vmem:[%s1405_s5] ss:$0 sm:$0xff] }
 0x122   : > { %v472_v6 = vpop.f32.mrf.mxu0 }
 0x123   : > { %v478_v7 = vmul.f32 1.442695, %v472_v6 }
 0x124   : > { %v846_v8 = vpop.f32.mrf.mxu0 }
 0x125   : > { %940 = vpow2.f32 %v478_v7 }
 0x12e   : > { %v939_v11 = vpop.eup %938 }
 0x12f   : > { %v486_v12 = vsel %vm485_vm2, %v939_v11, 0.0 }
 0x130   : > { %v491_v13 = vsel %vm490_vm3, %v486_v12, 0.0  ;;  %v509_v17 = vmul.f32 %v824_v14, %v486_v12 }
 0x131   : > { %492 = vadd.xlane.f32.xlu0 %v491_v13 }
 0x132   : > { %v941_v15 = vpop.eup %940 }
 0x133   : > { %v487_v16 = vsel %vm485_vm2, %v941_v15, 0.0 }
 0x134   : > { %v494_v18 = vsel %vm490_vm3, %v487_v16, 0.0  ;;  %v510_v19 = vmul.f32 %v824_v14, %v487_v16 }
 0x135   : > { %495 = vadd.xlane.f32.xlu0 %v494_v18 }
 0x136   : > { %v511_v20 = vpack.c.bf16 %v510_v19, %v509_v17 }
 0x138   : > { %850 = vmatmul.mubr.msk.bf16.vlgmr.msra.gmra.mxu1 %vm490_vm3, %v511_v20 }
 0x1ba   : > { %v493_v23 = vpop.xlane.xlu0 %492 }
 0x1bb   : > { %v497_v24 = vadd.f32 %v493_v23, %v488_v22 }
 0x1bd   : > { %500 = vst.msk [vmem:[#allocation3] sm:$0xff] %vm416_vm1, %v497_v24 }
 0x1be   : > { %v496_v26 = vpop.xlane.xlu0 %495 }
 0x1bf   : > { %v498_v27 = vadd.f32 %v496_v26, %v489_v25 }
 0x1c1   : > { %501 = vst.msk [vmem:[#allocation3 + $0x8] sm:$0xff] %vm416_vm1, %v498_v27 }
 0x1c4   : > { %v569_v28 = vld [vmem:[#allocation3] sm:$0xff] }
 0x1c5   : > { %942 = vrcp.f32 %v569_v28 }
 0x1c8   : > { %v570_v29 = vld [vmem:[#allocation3 + $0x8] sm:$0xff] }
 0x1c9   : > { %944 = vrcp.f32 %v570_v29 }
 0x1d2   : > { %v943_v30 = vpop.eup %942 }
 0x1d3   : > { %575 = vperm.xlu1 %934, %v943_v30  }
 0x1d6   : > { %v945_v31 = vpop.eup %944 }
 0x1d7   : > { %580 = vperm.xlu1 %934, %v945_v31  }
 0x1f8   : > { %v551_v32 = vpop.f32.mrf.mxu1 }
 0x1fa   : > { %v851_v33 = vpop.f32.mrf.mxu1 }
 0x1fc   : > { %v554_v34 = vpop.f32.mrf.mxu1 }
 0x1fe   : > { %v852_v35 = vpop.f32.mrf.mxu1 }
 0x24e   : > { %v576_v36 = vpop.permute.xlu1 %575 }
 0x24f   : > { %v583_v37 = vmul.f32 %v576_v36, %v551_v32 }
 0x251   : > { %v585_v39 = vmul.f32 0.1, %v583_v37 }
 0x252   : > { %v581_v40 = vpop.permute.xlu1 %580 }
 0x253   : > { %v587_v41 = vsub.f32 %v565_v38, %v585_v39  ;;  %v584_v42 = vmul.f32 %v581_v40, %v554_v34 }
 0x255   : > { %v586_v44 = vmul.f32 0.1, %v584_v42  ;;  %589 = vadd.xlane.f32.xlu0 %v587_v41  ;;  %v595_v46 = vmul.f32 %v587_v41, %v587_v41 }
 0x257   : > { %v588_v45 = vsub.f32 %v566_v43, %v586_v44 }
 0x259   : > { %597 = vadd.xlane.f32.xlu0 %v595_v46  ;;  %591 = vadd.xlane.f32.xlu1 %v588_v45  ;;  %v596_v47 = vmul.f32 %v588_v45, %v588_v45 }
 0x25d   : > { %599 = vadd.xlane.f32.xlu0 %v596_v47 }
 0x2de   : > { %v590_v48 = vpop.xlane.xlu0 %589 }
 0x2df   : > { %v593_v49 = vmul.f32 0.03125, %v590_v48 }
 0x2e1   : > { %v603_v52 = vmul.f32 %v593_v49, %v593_v49  ;;  %v609_v0 = vsub.f32 %v587_v41, %v593_v49 }
 0x2e2   : > { %v598_v50 = vpop.xlane.xlu0 %597  ;;  %v592_v51 = vpop.xlane.xlu1 %591 }
 0x2e3   : > { %v601_v53 = vmul.f32 0.03125, %v598_v50  ;;  %v594_v54 = vmul.f32 0.03125, %v592_v51 }
 0x2e5   : > { %v605_v55 = vsub.f32 %v601_v53, %v603_v52  ;;  %v604_v58 = vmul.f32 %v594_v54, %v594_v54  ;;  %v610_v6 = vsub.f32 %v588_v45, %v594_v54 }
 0x2e6   : > { %v600_v56 = vpop.xlane.xlu0 %599 }
 0x2e7   : > { %v607_v57 = vmax.f32 %v605_v55, 0.0  ;;  %v602_v59 = vmul.f32 0.03125, %v600_v56 }
 0x2e9   : > { %v611_v60 = vadd.f32 1e-06, %v607_v57  ;;  %v606_v61 = vsub.f32 %v602_v59, %v604_v58 }
 0x2eb   : > { %946 = vrsqrt.f32 %v611_v60  ;;  %v608_v62 = vmax.f32 %v606_v61, 0.0 }
 0x2ed   : > { %v612_v63 = vadd.f32 1e-06, %v608_v62 }
 0x2ef   : > { %948 = vrsqrt.f32 %v612_v63 }
 0x2f8   : > { %v947_v1 = vpop.eup %946 }
 0x2f9   : > { %v615_v3 = vmul.f32 %v947_v1, %v609_v0 }
 0x2fb   : > { %v624_v5 = vmul.f32 %v826_v2, %v615_v3 }
 0x2fc   : > { %v949_v7 = vpop.eup %948 }
 0x2fd   : > { %v616_v8 = vmul.f32 %v949_v7, %v610_v6  ;;  %v633_v9 = vadd.f32 %v827_v4, %v624_v5 }
 0x2ff   : > { %v625_v10 = vmul.f32 %v826_v2, %v616_v8  ;;  %635 = vst [vmem:[%s398_s30] sm:$0xff] %v633_v9 }
 0x301   : > { %v634_v11 = vadd.f32 %v827_v4, %v625_v10 }
 0x303   : > { %636 = vst [vmem:[%s398_s30 + $0x8] sm:$0xff] %v634_v11 }
 0x304   : > { %1047 = shalt.err (!%p1044_p5)
}
 0x305   : > { %s1048_s15 = scalar_lea.hbm %s1350_s8, 256  ;;  %s1052_s19 = scalar_lea.hbm %s1406_s6, 512 }
 0x306   : > { %p1049_p6 = scmp.ne.s32.totalorder %s1350_s8, %s1048_s15  ;;  %p1053_p13 = scmp.lt.s32.totalorder %s1350_s8, %s1406_s6 }
 0x307   : > { %p1054_p8 = scmp.lt.s32.totalorder %s1052_s19, %s1048_s15 }
 0x308   : > { %p1050_p7 = pnand %p1049_p6, %p1223_p9 }
 0x309   : > { %p1055_p12 = por %p1054_p8, %p1053_p13 }
 0x30a   : > { %p1051_p10 = pneg %p1050_p7 }
 0x30c   : > { %p1056_p0 = pnand %p1055_p12, %p1051_p10 }
 0x30e   : > { %1059 = shalt.err (!%p1056_p0)
}
 0x30f   : > { %s1131_s13 = smov 128   ;;  %s1132_s14 = smov 8  }
 0x310   : > { %859 = dma.vmem_to_hbm [thread:$0]  (%p1223_p9), %s1352_s17, 256, %s1350_s8, %s638_s11, %s1131_s13, %s1131_s13, %s1132_s14  }
 0x311 PF: > { %s668_s20 = sand.u32 1, %s1098_s21   ;;  %p1429_p1 = scmp.ge.s32.totalorder %s1118_s26, 2 }
 0x312   : > { %s669_s30 = scalar_lea.sflag [#allocation6], %s668_s20 }
 0x313   : > { %p872_p3 = pnand %p1429_p1, %p1230_p11 }
 0x315   : > { %p873_p2 = pneg %p872_p3 }
 0x317   : > { %1093 = dma.done.wait (%p873_p2), %s669_s30, 256  }
 0x318   : > { %1095 = vsyncadd (%p873_p2), %s669_s30, 4294967040  ;;  %s25_s26 = sadd.s32 1, %s1118_s26   ;;  %s1430_s23 = sld [smem:[#allocation14_spill]] }
 0x319   : > { %p22_p4 = scmp.ge.s32.totalorder %s25_s26, 4   ;;  %s1431_s10 = sld [smem:[#allocation16_spill]] }
 0x31a   : > { %s1432_s18 = sld [smem:[#allocation15_spill]]  ;;  %s1433_s21 = smov %s1102_s22 }
 0x31b   : > { %s1436_s24 = smov %s1114_s25 }
 0x31c   :  { %24 = sbr.rel (!%p22_p4) target bundleno = 11 (0xb), region = 124 }
 0x31e   : > { %s1434_s22 = smov %s1430_s23 }
 0x31f   : > { %s1435_s23 = smov %s1431_s10 }
 0x320   : > { %s1437_s25 = smov %s1432_s18 }
 0x321   :  { %674 = vsyncpa [#allocation5], 1 }
 0x322   :  { %676 = vsyncpa [#allocation5 + $0x1], 1 }
 0x323   :  { %677 = vsyncpa [#allocation8], 1 }
 0x324   :  { %679 = vsyncpa [#allocation8 + $0x1], 1 }
 0x325   :  { %680 = vsyncpa [#allocation6], 1 }
 0x326   :  { %682 = vsyncpa [#allocation6 + $0x1], 1 }

</bundles_post_ra>
